<compile_context>
chip_gen: v5e
topology: v5e:2x2
jax: 0.10.0
libtpu: 0.0.40
codegen_flags: <defaults>
</compile_context>

<pallas_src>
import functools

import jax
import jax.numpy as jnp
from jax.experimental import pallas as pl
from jax.experimental.pallas import tpu as pltpu


def _round_up(x, m):
    return (x + m - 1) // m * m


@functools.lru_cache(maxsize=1)
def _vmem_limit():
    """Generation-aware scoped-VMEM limit (v5e/v6e: ~96 MiB, v7x: ~48 MiB)."""
    cap = 64 * 1024 * 1024
    try:
        cap = int(pltpu.get_tpu_info().vmem_capacity_bytes)
    except Exception:
        pass
    return int(min(cap * 3 // 4, 100 * 1024 * 1024))


# ----------------------------------------------------------------------------
# Stage 1: fused GCN (1x1 conv + graph mixing + BN1) + ReLU as one matmul.
#   out = relu(X @ W + b)   X:(tm, K)  W:(K, tn)  b:(1, tn)   bf16 in, f32 acc.
# ----------------------------------------------------------------------------
def _mm_bias_relu_kernel(x_ref, w_ref, b_ref, o_ref):
    acc = jnp.dot(x_ref[...], w_ref[...], preferred_element_type=jnp.float32)
    o_ref[...] = jnp.maximum(acc + b_ref[...], 0.0).astype(o_ref.dtype)


def _pick_tn(n):
    if n <= 512:
        return n
    for tn in (512, 256, 128):   # 512/256 match the 2x256^2 MXU on v6e/v7x, x128 on v5e
        if n % tn == 0:
            return tn
    return n


def _pick_tm(m, k, tn, bytes_x, bytes_w, bytes_o, budget):
    tm = 512
    while tm > 8:
        # x / out tiles and the (k, tn) weight + bias tiles are double-buffered.
        need = 2 * (tm * k * bytes_x + tm * tn * bytes_o + k * tn * bytes_w + tn * 4)
        if need <= budget:
            break
        tm //= 2
    return max(8, min(tm, _round_up(m, 8)))


def mm_bias_relu(x, w, b, out_dtype=jnp.bfloat16):
    M, K = x.shape
    N = w.shape[1]
    tn = _pick_tn(N)
    tm = _pick_tm(M, K, tn, x.dtype.itemsize, w.dtype.itemsize,
                  jnp.dtype(out_dtype).itemsize, budget=_vmem_limit() * 6 // 10)
    Mp = _round_up(M, tm)
    if Mp != M:
        x = jnp.pad(x, ((0, Mp - M), (0, 0)))
    out = pl.pallas_call(
        _mm_bias_relu_kernel,
        out_shape=jax.ShapeDtypeStruct((Mp, N), out_dtype),
        grid_spec=pltpu.PrefetchScalarGridSpec(
            num_scalar_prefetch=0,
            grid=(Mp // tm, N // tn),
            in_specs=[pl.BlockSpec((tm, K), lambda i, j: (i, 0)),
                      pl.BlockSpec((K, tn), lambda i, j: (0, j)),
                      pl.BlockSpec((1, tn), lambda i, j: (0, j))],
            out_specs=pl.BlockSpec((tm, tn), lambda i, j: (i, j)),
        ),
        compiler_params=pltpu.CompilerParams(
            dimension_semantics=("parallel", "parallel"),
            vmem_limit_bytes=_vmem_limit()),
    )(x, w.astype(x.dtype), b.reshape(1, N).astype(jnp.float32))
    return out[:M] if Mp != M else out


# ----------------------------------------------------------------------------
# Stage 2: temporal conv (Kt taps, no im2col, no pad round trip) + BN2 + residual
# + ReLU.  One grid step = one sample.  Each tap is one static row/lane slice of
# the VMEM-resident slab plus one matmul into the f32 accumulator scratch.
# ----------------------------------------------------------------------------
def _tcn_kernel(*refs, taps, res_mode):
    h_ref, wt_ref, b_ref = refs[0], refs[1], refs[2]
    o_ref, acc_ref = refs[-2], refs[-1]
    kw = wt_ref.shape[1]                       # per-tap contraction width

    acc_ref[...] = jnp.broadcast_to(b_ref[...], acc_ref.shape)   # folded BN2 bias
    for dt, (d0, d1, s0, l0) in enumerate(taps):                 # static unroll (Kt small)
        n = d1 - d0
        if n <= 0:
            continue
        win = h_ref[0, s0:s0 + n, l0:l0 + kw]
        acc_ref[d0:d1, :] += jnp.dot(win, wt_ref[dt],
                                     preferred_element_type=jnp.float32)

    acc = acc_ref[...]
    if res_mode == "identity":
        acc = acc + refs[3][0].astype(jnp.float32)
    elif res_mode == "conv":
        acc = acc + jnp.dot(refs[3][0], refs[4][...],
                            preferred_element_type=jnp.float32) + refs[5][...]
    o_ref[0] = jnp.maximum(acc, 0.0).astype(o_ref.dtype)


def _tap_table(T, Tout, Kt, stride, pad, rows_per_t, phase_in_lanes, lane_block):
    """Static (dst_row0, dst_row1, src_row0, src_lane0) per temporal tap.

    Zero-pad semantics are preserved by restricting each tap to the output rows
    whose input time index lies in [0, T) (out-of-range taps contribute 0)."""
    taps = []
    for dt in range(Kt):
        off = dt - pad
        po = off % stride
        qo = (off - po) // stride
        lo = max(0, -((dt - pad) // stride))                  # ceil((pad-dt)/stride)
        hi = min(Tout, (T - 1 - dt + pad) // stride + 1)
        hi = max(hi, lo)
        if phase_in_lanes:                                    # block-diag path: rows=t
            s0, l0 = (lo + qo) * rows_per_t, po * lane_block
        else:                                                 # channel path: rows=(phase,t,v)
            s0, l0 = (po * Tout + lo + qo) * rows_per_t, 0
        taps.append((lo * rows_per_t, hi * rows_per_t, s0, l0))
    return tuple(taps)


# ----------------------------------------------------------------------------
# STGCNBlock forward (weight folding glue + the two Pallas kernels)
# ----------------------------------------------------------------------------
def _bn_affine(p, eps=1e-5):
    gamma, beta, mean, var = p
    scale = gamma / jnp.sqrt(var + eps)
    return scale, beta - mean * scale


def stgcn_block_forward(x, A, params, *, temporal_kernel_size, stride=1,
                        residual=True, compute_dtype=jnp.bfloat16):
    N, Cin, T, V = x.shape
    K = A.shape[0]
    Wg, bg = params["gcn_w"], params["gcn_b"]            # (K*Cout, Cin), (K*Cout,)
    Cout = Wg.shape[0] // K
    Kt = temporal_kernel_size
    pad = (Kt - 1) // 2
    Tout = (T - 1) // stride + 1
    VC, VCin = V * Cout, V * Cin
    cdt = compute_dtype

    s1, sh1 = _bn_affine(params["bn1"])
    s2, sh2 = _bn_affine(params["bn2"])

    # ---- Stage 1: fold gcn 1x1 conv + 'nkctv,kvw' mixing + BN1 into one matmul ------
    Wg_k = Wg.reshape(K, Cout, Cin)
    W1 = jnp.einsum("kci,kvw->viwc", Wg_k * s1[None, :, None], A).reshape(VCin, VC)
    b1 = (s1[None, :] * jnp.einsum("kc,kw->wc", bg.reshape(K, Cout), A.sum(axis=1))
          + sh1[None, :]).reshape(1, VC).astype(jnp.float32)

    x_ntvc = jnp.transpose(x, (0, 2, 3, 1))              # (N, T, V, Cin) channels-last
    x2d = x_ntvc.reshape(N * T, VCin).astype(cdt)
    h2d = mm_bias_relu(x2d, W1.astype(cdt), b1, out_dtype=cdt)   # (N*T, V*Cout)

    # ---- Stage 2 layout + folded (BN2-scaled) weights --------------------------------
    use_channel = Cout >= 128          # production widths: contract over channels only
    Wt, bt = params["tcn_w"], params["tcn_b"]            # (Cout, Cout, Kt), (Cout,)
    eyeV = jnp.eye(V, dtype=jnp.float32)

    h = h2d.reshape(N, T, VC)
    Tp = Tout * stride
    if Tp != T:                                          # tiny pad only when T % stride != 0
        h = jnp.pad(h, ((0, 0), (0, Tp - T), (0, 0)))

    if use_channel:
        if stride > 1:
            # de-interleave temporal phases so every tap window is ONE contiguous row
            # slice (single transpose; strided blocks only).
            h = h.reshape(N, Tout, stride, VC).transpose(0, 2, 1, 3)
        h_in = h.reshape(N, stride * Tout * V, Cout)     # rows=(phase, t, v), lanes=Cout
        wt_fold = jnp.transpose(Wt * s2[:, None, None], (2, 1, 0)).astype(cdt)  # (Kt,Cout,Cout)
        b2 = (s2 * bt + sh2).reshape(1, Cout).astype(jnp.float32)
        rows_out, lane_out = Tout * V, Cout
        taps = _tap_table(T, Tout, Kt, stride, pad, V, False, None)
    else:
        # toy widths: lanes=(v, c) stay lane-dense; block-diag tap weight over V.
        h_in = h.reshape(N, Tout, stride * VC)           # rows=t, lanes=(phase, v, c)
        wt_fold = jnp.einsum("vw,ocd->dvcwo", eyeV,
                             Wt * s2[:, None, None]).reshape(Kt, VC, VC).astype(cdt)
        b2 = jnp.tile(s2 * bt + sh2, V).reshape(1, VC).astype(jnp.float32)
        rows_out, lane_out = Tout, VC
        taps = _tap_table(T, Tout, Kt, stride, pad, 1, True, VC)

    # ---- residual branch (fused into the same kernel) --------------------------------
    if not residual:
        res_mode, res_args, res_specs = "none", [], []
    elif Cin == Cout and stride == 1:
        res_mode = "identity"
        if use_channel:
            xr = x_ntvc.reshape(N, T * V, Cout).astype(cdt)
        else:
            xr = x_ntvc.reshape(N, T, VC).astype(cdt)
        res_args = [xr]
        res_specs = [pl.BlockSpec((1, rows_out, lane_out), lambda n: (n, 0, 0))]
    else:
        res_mode = "conv"
        sr, shr = _bn_affine(params["bn_res"])
        Wr, br = params["res_w"], params["res_b"]        # (Cout, Cin), (Cout,)
        xs = x_ntvc[:, ::stride]                         # (N, Tout, V, Cin)
        if use_channel:
            xr = xs.reshape(N, Tout * V, Cin).astype(cdt)
            wr = (Wr * sr[:, None]).T.astype(cdt)        # (Cin, Cout)
            br_lane = (sr * br + shr).reshape(1, Cout).astype(jnp.float32)
            kres = Cin
        else:
            xr = xs.reshape(N, Tout, VCin).astype(cdt)
            wr = jnp.einsum("vw,oi->viwo", eyeV,
                            Wr * sr[:, None]).reshape(VCin, VC).astype(cdt)
            br_lane = jnp.tile(sr * br + shr, V).reshape(1, VC).astype(jnp.float32)
            kres = VCin
        res_args = [xr, wr, br_lane]
        res_specs = [pl.BlockSpec((1, rows_out, kres), lambda n: (n, 0, 0)),
                     pl.BlockSpec((kres, lane_out), lambda n: (0, 0)),
                     pl.BlockSpec((1, lane_out), lambda n: (0, 0))]

    kernel = functools.partial(_tcn_kernel, taps=taps, res_mode=res_mode)
    out3 = pl.pallas_call(
        kernel,
        out_shape=jax.ShapeDtypeStruct((N, rows_out, lane_out), jnp.float32),
        grid_spec=pltpu.PrefetchScalarGridSpec(
            num_scalar_prefetch=0,
            grid=(N,),
            in_specs=[pl.BlockSpec((1, h_in.shape[1], h_in.shape[2]),
                                   lambda n: (n, 0, 0)),
                      pl.BlockSpec(wt_fold.shape, lambda n: (0, 0, 0)),
                      pl.BlockSpec((1, lane_out), lambda n: (0, 0))] + res_specs,
            out_specs=pl.BlockSpec((1, rows_out, lane_out), lambda n: (n, 0, 0)),
            scratch_shapes=[pltpu.VMEM((rows_out, lane_out), jnp.float32)],
        ),
        compiler_params=pltpu.CompilerParams(
            dimension_semantics=("parallel",),
            vmem_limit_bytes=_vmem_limit()),
    )(h_in, wt_fold, b2, *res_args)

    out = out3.reshape(N, Tout, V, Cout).transpose(0, 3, 1, 2)   # back to NCHW
    return out, A


# ----------------------------------------------------------------------------
# Pure-JAX f32 reference (mirrors the PyTorch module in eval mode)
# ----------------------------------------------------------------------------
def reference_forward(x, A, params, *, temporal_kernel_size, stride=1, residual=True):
    Kt = temporal_kernel_size
    pad = (Kt - 1) // 2
    N, Cin, T, V = x.shape
    K = A.shape[0]
    Wg, bg = params["gcn_w"], params["gcn_b"]
    Cout = Wg.shape[0] // K
    Tout = (T - 1) // stride + 1

    def bn(t, p, eps=1e-5):
        g, b, m, v = p
        return (t - m[None, :, None, None]) / jnp.sqrt(v[None, :, None, None] + eps) \
            * g[None, :, None, None] + b[None, :, None, None]

    y = jnp.einsum("nitv,oi->notv", x, Wg) + bg[None, :, None, None]
    y = y.reshape(N, K, Cout, T, V)
    y = jnp.einsum("nkctv,kvw->nctw", y, A)

    h = jax.nn.relu(bn(y, params["bn1"]))
    h_pad = jnp.pad(h, ((0, 0), (0, 0), (pad, pad), (0, 0)))
    Wt, bt = params["tcn_w"], params["tcn_b"]
    z = sum(jnp.einsum("nitv,oi->notv",
                       h_pad[:, :, dt:dt + stride * (Tout - 1) + 1:stride, :],
                       Wt[:, :, dt]) for dt in range(Kt)) + bt[None, :, None, None]
    z = bn(z, params["bn2"])

    if not residual:
        r = 0.0
    elif Cin == Cout and stride == 1:
        r = x
    else:
        Wr, br = params["res_w"], params["res_b"]
        r = jnp.einsum("nitv,oi->notv", x[:, :, ::stride, :], Wr) + br[None, :, None, None]
        r = bn(r, params["bn_res"])
    return jax.nn.relu(z + r), A


# ----------------------------------------------------------------------------
if __name__ == "__main__":
    N, T, V, K, Kt = 2, 16, 16, 3, 3
    jax.random.PRNGKey(0)  # deterministic seeding base

    def bn_params(k, c):
        k1, k2, k3, k4 = jax.random.split(k, 4)
        return (1.0 + 0.1 * jax.random.normal(k1, (c,), jnp.float32),
                0.1 * jax.random.normal(k2, (c,), jnp.float32),
                0.1 * jax.random.normal(k3, (c,), jnp.float32),
                0.5 + jnp.abs(jax.random.normal(k4, (c,), jnp.float32)) * 0.5)

    def make_case(seed, cin, cout):
        ks = jax.random.split(jax.random.PRNGKey(seed), 12)
        x = jax.random.normal(ks[0], (N, cin, T, V), jnp.float32)
        A = jax.nn.softmax(jax.random.normal(ks[1], (K, V, V), jnp.float32), axis=-1)
        params = {
            "gcn_w": 0.2 * jax.random.normal(ks[2], (K * cout, cin), jnp.float32),
            "gcn_b": 0.1 * jax.random.normal(ks[3], (K * cout,), jnp.float32),
            "tcn_w": 0.2 * jax.random.normal(ks[4], (cout, cout, Kt), jnp.float32),
            "tcn_b": 0.1 * jax.random.normal(ks[5], (cout,), jnp.float32),
            "res_w": 0.2 * jax.random.normal(ks[6], (cout, cin), jnp.float32),
            "res_b": 0.1 * jax.random.normal(ks[7], (cout,), jnp.float32),
            "bn1": bn_params(ks[8], cout),
            "bn2": bn_params(ks[9], cout),
            "bn_res": bn_params(ks[10], cout),
        }
        return x, A, params

    cases = [
        # (cin, cout, stride, residual)
        (4, 8, 1, True),      # conv residual, block-diag path
        (8, 8, 1, True),      # identity residual, block-diag path
        (4, 8, 1, False),     # no residual, block-diag path
        (4, 8, 2, True),      # stride-2 conv residual, block-diag path
        (32, 128, 1, True),   # conv residual, channel-contraction path
        (32, 128, 2, True),   # stride-2 conv residual, channel path (phase transpose)
    ]

    for idx, (cin, cout, stride, residual) in enumerate(cases):
        x, A, params = make_case(idx, cin, cout)
        fwd = functools.partial(stgcn_block_forward, temporal_kernel_size=Kt,
                                stride=stride, residual=residual)
        out, A_out = jax.jit(fwd)(x, A, params)
        jax.block_until_ready(out)

        ref_out, _ = reference_forward(x, A, params, temporal_kernel_size=Kt,
                                       stride=stride, residual=residual)
        Tout = (T - 1) // stride + 1
        assert out.shape == (N, cout, Tout, V), (out.shape, (N, cout, Tout, V))
        scale = float(jnp.max(jnp.abs(ref_out)))
        max_err = float(jnp.max(jnp.abs(out - ref_out)))
        rel_l2 = float(jnp.linalg.norm(out - ref_out) /
                       (jnp.linalg.norm(ref_out) + 1e-9))
        # bf16 activations/weights with f32 accumulation: loose but meaningful bounds.
        assert max_err <= 0.05 * scale + 0.02, (idx, max_err, scale)
        assert rel_l2 <= 2e-2, (idx, rel_l2)

    print("KERNEL_OK")
</pallas_src>

<mosaic_0001>
module attributes {stable_mosaic.version = 11 : i64} {
  func.func @_mm_bias_relu_kernel(%arg0: i32, %arg1: i32, %arg2: memref<32x64xbf16, #tpu.memory_space<vmem>>, %arg3: memref<64x128xbf16, #tpu.memory_space<vmem>>, %arg4: memref<1x128xf32, #tpu.memory_space<vmem>>, %arg5: memref<32x128xbf16, #tpu.memory_space<vmem>>) attributes {dimension_semantics = [#tpu.dimension_semantics<parallel>, #tpu.dimension_semantics<parallel>], iteration_bounds = array<i64: 1, 1>, scalar_prefetch = 0 : i64, scratch_operands = 0 : i64, tpu.core_type = #tpu.core_type<tc>, window_params = [{transform_indices = @transform_0, window_bounds = array<i64: 32, 64>}, {transform_indices = @transform_1, window_bounds = array<i64: 64, 128>}, {transform_indices = @transform_2, window_bounds = array<i64: 1, 128>}, {transform_indices = @transform_3, window_bounds = array<i64: 32, 128>}]} {
    %c0 = arith.constant 0 : index
    %c0_0 = arith.constant 0 : index
    %0 = vector.load %arg2[%c0, %c0_0] : memref<32x64xbf16, #tpu.memory_space<vmem>>, vector<32x64xbf16>
    %c0_1 = arith.constant 0 : index
    %c0_2 = arith.constant 0 : index
    %1 = vector.load %arg3[%c0_1, %c0_2] : memref<64x128xbf16, #tpu.memory_space<vmem>>, vector<64x128xbf16>
    %cst = arith.constant dense<0.000000e+00> : vector<32x128xf32>
    %2 = tpu.matmul %0, %1, %cst {dimension_numbers = #tpu.dot_dimension_numbers<[1], [0], [0], [1], [0, 0, 1, 1], [], []>} : vector<32x64xbf16>, vector<64x128xbf16>, vector<32x128xf32> -> vector<32x128xf32>
    %c0_3 = arith.constant 0 : index
    %c0_4 = arith.constant 0 : index
    %3 = vector.load %arg4[%c0_3, %c0_4] : memref<1x128xf32, #tpu.memory_space<vmem>>, vector<1x128xf32>
    %4 = vector.broadcast %3 : vector<1x128xf32> to vector<32x128xf32>
    %5 = arith.addf %2, %4 : vector<32x128xf32>
    %cst_5 = arith.constant 0.000000e+00 : f32
    %6 = vector.broadcast %cst_5 : f32 to vector<32x128xf32>
    %7 = arith.maximumf %5, %6 : vector<32x128xf32>
    %8 = arith.truncf %7 : vector<32x128xf32> to vector<32x128xbf16>
    %c0_6 = arith.constant 0 : index
    %c0_7 = arith.constant 0 : index
    %9 = vector.load %arg5[%c0_6, %c0_7] : memref<32x128xbf16, #tpu.memory_space<vmem>>, vector<32x128xbf16>
    tpu.vector_store %arg5[%c0_6, %c0_7], %8 {strides = array<i32>} : memref<32x128xbf16, #tpu.memory_space<vmem>>, vector<32x128xbf16>,
    return
  }
  func.func @transform_0(%arg0: i32, %arg1: i32) -> (i32, i32) {
    %c0_i32 = arith.constant 0 : i32
    %c0_i32_0 = arith.constant 0 : i32
    return %arg0, %c0_i32 : i32, i32
  }
  func.func @transform_1(%arg0: i32, %arg1: i32) -> (i32, i32) {
    %c0_i32 = arith.constant 0 : i32
    %c0_i32_0 = arith.constant 0 : i32
    return %c0_i32, %arg1 : i32, i32
  }
  func.func @transform_2(%arg0: i32, %arg1: i32) -> (i32, i32) {
    %c0_i32 = arith.constant 0 : i32
    %c0_i32_0 = arith.constant 0 : i32
    return %c0_i32, %arg1 : i32, i32
  }
  func.func @transform_3(%arg0: i32, %arg1: i32) -> (i32, i32) {
    %c0_i32 = arith.constant 0 : i32
    return %arg0, %arg1 : i32, i32
  }
}

module attributes {stable_mosaic.version = 11 : i64} {
  func.func @_tcn_kernel(%arg0: i32, %arg1: memref<1x16x128xbf16, #tpu.memory_space<vmem>>, %arg2: memref<3x128x128xbf16, #tpu.memory_space<vmem>>, %arg3: memref<1x128xf32, #tpu.memory_space<vmem>>, %arg4: memref<1x16x64xbf16, #tpu.memory_space<vmem>>, %arg5: memref<64x128xbf16, #tpu.memory_space<vmem>>, %arg6: memref<1x128xf32, #tpu.memory_space<vmem>>, %arg7: memref<1x16x128xf32, #tpu.memory_space<vmem>>, %arg8: memref<16x128xf32, #tpu.memory_space<vmem>>) attributes {dimension_semantics = [#tpu.dimension_semantics<parallel>], iteration_bounds = array<i64: 2>, scalar_prefetch = 0 : i64, scratch_operands = 1 : i64, tpu.core_type = #tpu.core_type<tc>, window_params = [{transform_indices = @transform_0, window_bounds = array<i64: 1, 16, 128>}, {pipeline_mode = #tpu.pipeline_mode<synchronous>, transform_indices = @transform_1, window_bounds = array<i64: 3, 128, 128>}, {pipeline_mode = #tpu.pipeline_mode<synchronous>, transform_indices = @transform_2, window_bounds = array<i64: 1, 128>}, {transform_indices = @transform_3, window_bounds = array<i64: 1, 16, 64>}, {pipeline_mode = #tpu.pipeline_mode<synchronous>, transform_indices = @transform_4, window_bounds = array<i64: 64, 128>}, {pipeline_mode = #tpu.pipeline_mode<synchronous>, transform_indices = @transform_5, window_bounds = array<i64: 1, 128>}, {transform_indices = @transform_6, window_bounds = array<i64: 1, 16, 128>}]} {
    %c0 = arith.constant 0 : index
    %c0_0 = arith.constant 0 : index
    %0 = vector.load %arg3[%c0, %c0_0] : memref<1x128xf32, #tpu.memory_space<vmem>>, vector<1x128xf32>
    %1 = vector.shape_cast %0 : vector<1x128xf32> to vector<1x128xf32>
    %2 = vector.broadcast %1 : vector<1x128xf32> to vector<16x128xf32>
    %c0_1 = arith.constant 0 : index
    %c0_2 = arith.constant 0 : index
    %3 = vector.load %arg8[%c0_1, %c0_2] : memref<16x128xf32, #tpu.memory_space<vmem>>, vector<16x128xf32>
    tpu.vector_store %arg8[%c0_1, %c0_2], %2 {strides = array<i32>} : memref<16x128xf32, #tpu.memory_space<vmem>>, vector<16x128xf32>,
    %c0_3 = arith.constant 0 : index
    %c0_4 = arith.constant 0 : index
    %c0_5 = arith.constant 0 : index
    %4 = vector.load %arg1[%c0_3, %c0_4, %c0_5] : memref<1x16x128xbf16, #tpu.memory_space<vmem>>, vector<1x15x128xbf16>
    %5 = vector.shape_cast %4 : vector<1x15x128xbf16> to vector<15x128xbf16>
    %c1 = arith.constant 1 : index
    %c0_6 = arith.constant 0 : index
    %6 = vector.load %arg8[%c1, %c0_6] : memref<16x128xf32, #tpu.memory_space<vmem>>, vector<15x128xf32>
    %c0_7 = arith.constant 0 : index
    %c0_8 = arith.constant 0 : index
    %c0_9 = arith.constant 0 : index
    %7 = vector.load %arg2[%c0_7, %c0_8, %c0_9] : memref<3x128x128xbf16, #tpu.memory_space<vmem>>, vector<1x128x128xbf16>
    %8 = vector.shape_cast %7 : vector<1x128x128xbf16> to vector<128x128xbf16>
    %cst = arith.constant dense<0.000000e+00> : vector<15x128xf32>
    %9 = tpu.matmul %5, %8, %cst {dimension_numbers = #tpu.dot_dimension_numbers<[1], [0], [0], [1], [0, 0, 1, 1], [], []>} : vector<15x128xbf16>, vector<128x128xbf16>, vector<15x128xf32> -> vector<15x128xf32>
    %10 = arith.addf %6, %9 : vector<15x128xf32>
    %c1_10 = arith.constant 1 : index
    %c0_11 = arith.constant 0 : index
    %11 = vector.load %arg8[%c1_10, %c0_11] : memref<16x128xf32, #tpu.memory_space<vmem>>, vector<15x128xf32>
    tpu.vector_store %arg8[%c1_10, %c0_11], %10 {strides = array<i32>} : memref<16x128xf32, #tpu.memory_space<vmem>>, vector<15x128xf32>,
    %c0_12 = arith.constant 0 : index
    %c0_13 = arith.constant 0 : index
    %c0_14 = arith.constant 0 : index
    %12 = vector.load %arg1[%c0_12, %c0_13, %c0_14] : memref<1x16x128xbf16, #tpu.memory_space<vmem>>, vector<1x16x128xbf16>
    %13 = vector.shape_cast %12 : vector<1x16x128xbf16> to vector<16x128xbf16>
    %c0_15 = arith.constant 0 : index
    %c0_16 = arith.constant 0 : index
    %14 = vector.load %arg8[%c0_15, %c0_16] : memref<16x128xf32, #tpu.memory_space<vmem>>, vector<16x128xf32>
    %c1_17 = arith.constant 1 : index
    %c0_18 = arith.constant 0 : index
    %c0_19 = arith.constant 0 : index
    %15 = vector.load %arg2[%c1_17, %c0_18, %c0_19] : memref<3x128x128xbf16, #tpu.memory_space<vmem>>, vector<1x128x128xbf16>
    %16 = vector.shape_cast %15 : vector<1x128x128xbf16> to vector<128x128xbf16>
    %cst_20 = arith.constant dense<0.000000e+00> : vector<16x128xf32>
    %17 = tpu.matmul %13, %16, %cst_20 {dimension_numbers = #tpu.dot_dimension_numbers<[1], [0], [0], [1], [0, 0, 1, 1], [], []>} : vector<16x128xbf16>, vector<128x128xbf16>, vector<16x128xf32> -> vector<16x128xf32>
    %18 = arith.addf %14, %17 : vector<16x128xf32>
    %c0_21 = arith.constant 0 : index
    %c0_22 = arith.constant 0 : index
    %19 = vector.load %arg8[%c0_21, %c0_22] : memref<16x128xf32, #tpu.memory_space<vmem>>, vector<16x128xf32>
    tpu.vector_store %arg8[%c0_21, %c0_22], %18 {strides = array<i32>} : memref<16x128xf32, #tpu.memory_space<vmem>>, vector<16x128xf32>,
    %c0_23 = arith.constant 0 : index
    %c1_24 = arith.constant 1 : index
    %c0_25 = arith.constant 0 : index
    %20 = vector.load %arg1[%c0_23, %c1_24, %c0_25] : memref<1x16x128xbf16, #tpu.memory_space<vmem>>, vector<1x15x128xbf16>
    %21 = vector.shape_cast %20 : vector<1x15x128xbf16> to vector<15x128xbf16>
    %c0_26 = arith.constant 0 : index
    %c0_27 = arith.constant 0 : index
    %22 = vector.load %arg8[%c0_26, %c0_27] : memref<16x128xf32, #tpu.memory_space<vmem>>, vector<15x128xf32>
    %c2 = arith.constant 2 : index
    %c0_28 = arith.constant 0 : index
    %c0_29 = arith.constant 0 : index
    %23 = vector.load %arg2[%c2, %c0_28, %c0_29] : memref<3x128x128xbf16, #tpu.memory_space<vmem>>, vector<1x128x128xbf16>
    %24 = vector.shape_cast %23 : vector<1x128x128xbf16> to vector<128x128xbf16>
    %cst_30 = arith.constant dense<0.000000e+00> : vector<15x128xf32>
    %25 = tpu.matmul %21, %24, %cst_30 {dimension_numbers = #tpu.dot_dimension_numbers<[1], [0], [0], [1], [0, 0, 1, 1], [], []>} : vector<15x128xbf16>, vector<128x128xbf16>, vector<15x128xf32> -> vector<15x128xf32>
    %26 = arith.addf %22, %25 : vector<15x128xf32>
    %c0_31 = arith.constant 0 : index
    %c0_32 = arith.constant 0 : index
    %27 = vector.load %arg8[%c0_31, %c0_32] : memref<16x128xf32, #tpu.memory_space<vmem>>, vector<15x128xf32>
    tpu.vector_store %arg8[%c0_31, %c0_32], %26 {strides = array<i32>} : memref<16x128xf32, #tpu.memory_space<vmem>>, vector<15x128xf32>,
    %c0_33 = arith.constant 0 : index
    %c0_34 = arith.constant 0 : index
    %28 = vector.load %arg8[%c0_33, %c0_34] : memref<16x128xf32, #tpu.memory_space<vmem>>, vector<16x128xf32>
    %c0_35 = arith.constant 0 : index
    %c0_36 = arith.constant 0 : index
    %c0_37 = arith.constant 0 : index
    %29 = vector.load %arg4[%c0_35, %c0_36, %c0_37] : memref<1x16x64xbf16, #tpu.memory_space<vmem>>, vector<1x16x64xbf16>
    %30 = vector.shape_cast %29 : vector<1x16x64xbf16> to vector<16x64xbf16>
    %c0_38 = arith.constant 0 : index
    %c0_39 = arith.constant 0 : index
    %31 = vector.load %arg5[%c0_38, %c0_39] : memref<64x128xbf16, #tpu.memory_space<vmem>>, vector<64x128xbf16>
    %cst_40 = arith.constant dense<0.000000e+00> : vector<16x128xf32>
    %32 = tpu.matmul %30, %31, %cst_40 {dimension_numbers = #tpu.dot_dimension_numbers<[1], [0], [0], [1], [0, 0, 1, 1], [], []>} : vector<16x64xbf16>, vector<64x128xbf16>, vector<16x128xf32> -> vector<16x128xf32>
    %33 = arith.addf %28, %32 : vector<16x128xf32>
    %c0_41 = arith.constant 0 : index
    %c0_42 = arith.constant 0 : index
    %34 = vector.load %arg6[%c0_41, %c0_42] : memref<1x128xf32, #tpu.memory_space<vmem>>, vector<1x128xf32>
    %35 = vector.broadcast %34 : vector<1x128xf32> to vector<16x128xf32>
    %36 = arith.addf %33, %35 : vector<16x128xf32>
    %cst_43 = arith.constant 0.000000e+00 : f32
    %37 = vector.broadcast %cst_43 : f32 to vector<16x128xf32>
    %38 = arith.maximumf %36, %37 : vector<16x128xf32>
    %c0_44 = arith.constant 0 : index
    %c0_45 = arith.constant 0 : index
    %c0_46 = arith.constant 0 : index
    %39 = vector.load %arg7[%c0_44, %c0_45, %c0_46] : memref<1x16x128xf32, #tpu.memory_space<vmem>>, vector<1x16x128xf32>
    %40 = vector.shape_cast %39 : vector<1x16x128xf32> to vector<16x128xf32>
    %41 = vector.shape_cast %38 : vector<16x128xf32> to vector<1x16x128xf32>
    tpu.vector_store %arg7[%c0_44, %c0_45, %c0_46], %41 {strides = array<i32>} : memref<1x16x128xf32, #tpu.memory_space<vmem>>, vector<1x16x128xf32>,
    return
  }
  func.func @transform_0(%arg0: i32) -> (i32, i32, i32) {
    %c0_i32 = arith.constant 0 : i32
    %c0_i32_0 = arith.constant 0 : i32
    %c0_i32_1 = arith.constant 0 : i32
    return %arg0, %c0_i32, %c0_i32_0 : i32, i32, i32
  }
  func.func @transform_1(%arg0: i32) -> (i32, i32, i32) {
    %c0_i32 = arith.constant 0 : i32
    %c0_i32_0 = arith.constant 0 : i32
    %c0_i32_1 = arith.constant 0 : i32
    %c0_i32_2 = arith.constant 0 : i32
    return %c0_i32, %c0_i32_0, %c0_i32_1 : i32, i32, i32
  }
  func.func @transform_2(%arg0: i32) -> (i32, i32) {
    %c0_i32 = arith.constant 0 : i32
    %c0_i32_0 = arith.constant 0 : i32
    %c0_i32_1 = arith.constant 0 : i32
    return %c0_i32, %c0_i32_0 : i32, i32
  }
  func.func @transform_3(%arg0: i32) -> (i32, i32, i32) {
    %c0_i32 = arith.constant 0 : i32
    %c0_i32_0 = arith.constant 0 : i32
    %c0_i32_1 = arith.constant 0 : i32
    return %arg0, %c0_i32, %c0_i32_0 : i32, i32, i32
  }
  func.func @transform_4(%arg0: i32) -> (i32, i32) {
    %c0_i32 = arith.constant 0 : i32
    %c0_i32_0 = arith.constant 0 : i32
    %c0_i32_1 = arith.constant 0 : i32
    return %c0_i32, %c0_i32_0 : i32, i32
  }
  func.func @transform_5(%arg0: i32) -> (i32, i32) {
    %c0_i32 = arith.constant 0 : i32
    %c0_i32_0 = arith.constant 0 : i32
    %c0_i32_1 = arith.constant 0 : i32
    return %c0_i32, %c0_i32_0 : i32, i32
  }
  func.func @transform_6(%arg0: i32) -> (i32, i32, i32) {
    %c0_i32 = arith.constant 0 : i32
    %c0_i32_0 = arith.constant 0 : i32
    %c0_i32_1 = arith.constant 0 : i32
    return %arg0, %c0_i32, %c0_i32_0 : i32, i32, i32
  }
}

</mosaic_0001>

<bundles_post_ra>
// kernel: stgcn_block_forward.2
= control target key start
LH: loop header
LB: loop body
LE: loop exit
PB: predicated region body
PF: predicated region fallthrough
CT: control target
= control target key end

     0   :  { %vm65_vm0 = vcmask 523264   ;;  %s202_s1 = inlined_call_operand.vmem [shape: bf16[64,128], index: 1, kind: input, shape index: {}]   ;;  %s203_s2 = inlined_call_operand.vmem [shape: f32[1,128], index: 2, kind: input, shape index: {}]   ;;  %s204_s0 = inlined_call_operand.vmem [shape: bf16[32,64], index: 0, kind: input, shape index: {}]   ;;  %s205_s3 = inlined_call_operand.vmem [shape: bf16[32,128], index: 3, kind: output, shape index: {}]  }
   0x1   :  { %v138_v0 = vld [vmem:[%s202_s1 + $0x18] sm:$0xff]  ;;  %v137_v1 = vld [vmem:[%s202_s1 + $0x10] sm:$0xff]  ;;  %v136_v2 = vld [vmem:[%s202_s1 + $0x8] sm:$0xff] }
   0x2   :  { %76 = vmatpush.bf16.msra.mxu0 %v138_v0  ;;  %150 = vmatpush.bf16.msra.mxu1 %v138_v0  ;;  %v135_v3 = vld [vmem:[%s202_s1] sm:$0xff]  ;;  %v134_v5 = vld [vmem:[%s204_s0 + $0x8] sm:$0xff] }
   0x3   :  { %v133_v4 = vld [vmem:[%s204_s0] sm:$0xff] }
   0x4   :  { %v154_v8 = vld [vmem:[%s203_s2] ss:$0 sm:$0xff] }
   0x6   :  { %77 = vmatpush.bf16.msra.mxu0 %v137_v1  ;;  %151 = vmatpush.bf16.msra.mxu1 %v137_v1 }
   0xa   :  { %78 = vmatpush.bf16.msra.mxu0 %v136_v2  ;;  %152 = vmatpush.bf16.msra.mxu1 %v136_v2 }
   0xe   :  { %79 = vmatpush.bf16.msra.mxu0 %v135_v3  ;;  %153 = vmatpush.bf16.msra.mxu1 %v135_v3 }
  0x11   :  { %131 = vmatmul.msk.bf16.vlgmr.msra.gmra.mxu0 %vm65_vm0, %v133_v4  ;;  %132 = vmatmul.msk.bf16.vlgmr.msra.gmra.mxu1 %vm65_vm0, %v134_v5 }
  0x8e   :  { %v81_v6 = vpop.f32.mrf.mxu0  ;;  %v86_v7 = vpop.f32.mrf.mxu1 }
  0x8f   :  { %v82_v9 = vadd.f32 %v154_v8, %v81_v6  ;;  %v87_v10 = vadd.f32 %v154_v8, %v86_v7 }
  0x91   :  { %v91_v15 = vmax.f32 %v82_v9, 0.0  ;;  %v93_v16 = vmax.f32 %v87_v10, 0.0 }
  0x96   :  { %v83_v11 = vpop.f32.mrf.mxu0  ;;  %v88_v12 = vpop.f32.mrf.mxu1 }
  0x97   :  { %v84_v13 = vadd.f32 %v154_v8, %v83_v11  ;;  %v89_v14 = vadd.f32 %v154_v8, %v88_v12 }
  0x99   :  { %v92_v17 = vmax.f32 %v84_v13, 0.0  ;;  %v94_v18 = vmax.f32 %v89_v14, 0.0 }
  0x9b   :  { %v142_v19 = vpack.c.bf16 %v92_v17, %v91_v15  ;;  %v147_v20 = vpack.c.bf16 %v94_v18, %v93_v16 }
  0x9d   :  { %143 = vst [vmem:[%s205_s3] sm:$0xff] %v142_v19  }
  0x9e   :  { %149 = vst [vmem:[%s205_s3 + $0x8] sm:$0xff] %v147_v20  }

// kernel: tile.13
= control target key start
LH: loop header
LB: loop body
LE: loop exit
PB: predicated region body
PF: predicated region fallthrough
CT: control target
= control target key end

     0   :  { %s28_s0 = inlined_call_operand.vmem [shape: f32[8], index: 0, kind: input, shape index: {}]   ;;  %s29_s1 = inlined_call_operand.vmem [shape: f32[16,8], index: 1, kind: output, shape index: {}]  }
   0x1   :  { %v4_v0 = vld [vmem:[%s28_s0] ss:$0 sm:$0xff] }
   0x2   :  { %5 = vst [vmem:[%s29_s1] sm:$0xff] %v4_v0 }
   0x3   :  { %8 = vst [vmem:[%s29_s1 + $0x8] sm:$0xff] %v4_v0 }

// kernel: stgcn_block_forward.3
= control target key start
LH: loop header
LB: loop body
LE: loop exit
PB: predicated region body
PF: predicated region fallthrough
CT: control target
= control target key end

     0   :  { %s964_s21 = smov 0   ;;  %s1083_s0 = inlined_call_operand.vmem [shape: bf16[2,16,128], index: 0, kind: input, shape index: {}]   ;;  %s1084_s1 = inlined_call_operand.vmem [shape: bf16[3,128,128], index: 1, kind: input, shape index: {}]   ;;  %s1085_s2 = inlined_call_operand.vmem [shape: f32[1,128], index: 2, kind: input, shape index: {}]   ;;  %s1086_s3 = inlined_call_operand.vmem [shape: bf16[2,16,64], index: 3, kind: input, shape index: {}]   ;;  %s1087_s4 = inlined_call_operand.vmem [shape: bf16[64,128], index: 4, kind: input, shape index: {}]   ;;  %s1088_s5 = inlined_call_operand.vmem [shape: f32[1,128], index: 5, kind: input, shape index: {}]   ;;  %s1089_s6 = inlined_call_operand.vmem [shape: f32[2,16,128], index: 6, kind: output, shape index: {}]  }
   0x1 LB: > { %s702_s22 = sadd.s32 4294967295, %s927_s21   ;;  %p706_p0 = scmp.ge.s32.totalorder %s927_s21, 1  ;;  %s927_s21 = sphi %s964_s21, %s16_s21  }
   0x2   : > { %p222_p1 = scmp.lt.s32.totalorder %s927_s21, 3 }
   0x4   : > { %p223_p2 = pnand %p706_p0, %p222_p1 }
   0x5   : > { %p257_p3 = scmp.lt.s32.totalorder (!%p223_p2), %s702_s22, 1 }
   0x6   : > { %226 = sbr.rel (%p223_p2) target bundleno = 214 (0xd6), region = 44 }
   0xb   : > { %v887_v0 = vld [vmem:[%s1084_s1 + $0x38] sm:$0xff]  ;;  %v886_v3 = vld [vmem:[%s1084_s1 + $0x30] sm:$0xff]  ;;  %v885_v6 = vld [vmem:[%s1084_s1 + $0x28] sm:$0xff]  ;;  %s1091_s22 = smov (!%p257_p3, %s702_s22), 1  ;;  %vm605_vm0 = vcmask 523264  }
   0xc   : > { %v896_v1 = vld [vmem:[%s1084_s1 + $0x78] sm:$0xff]  ;;  %353 = vmatpush.bf16.msra.mxu0 %v887_v0  ;;  %v895_v4 = vld [vmem:[%s1084_s1 + $0x70] sm:$0xff]  ;;  %v894_v7 = vld [vmem:[%s1084_s1 + $0x68] sm:$0xff]  ;;  %s876_s7 = sshll.u32 %s1091_s22, 3  ;;  %s878_s24 = sshll.u32 %s1091_s22, 4 }
   0xd   : > { %v905_v2 = vld [vmem:[%s1084_s1 + $0xb8] sm:$0xff]  ;;  %446 = vmatpush.bf16.msra.mxu1 %v896_v1  ;;  %v904_v5 = vld [vmem:[%s1084_s1 + $0xb0] sm:$0xff]  ;;  %v903_v8 = vld [vmem:[%s1084_s1 + $0xa8] sm:$0xff]  ;;  %s1032_s16 = scalar_lea.vmem %s1083_s0, %s876_s7  ;;  %s266_s8 = scalar_lea.vmem %s1086_s3, %s876_s7 }
   0xe   : > { %546 = vmatpush.bf16.msra.mxu2 %v905_v2  ;;  %v910_v9 = vld [vmem:[%s1087_s4 + $0x18] sm:$0xff]  ;;  %v884_v10 = vld [vmem:[%s1084_s1 + $0x20] sm:$0xff]  ;;  %v909_v13 = vld [vmem:[%s1087_s4 + $0x10] sm:$0xff]  ;;  %s271_s27 = scalar_lea.vmem %s1089_s6, %s878_s24 }
   0xf   : > { %v893_v11 = vld [vmem:[%s1084_s1 + $0x60] sm:$0xff]  ;;  %613 = vmatpush.bf16.msra.mxu3 %v910_v9  ;;  %v883_v15 = vld [vmem:[%s1084_s1 + $0x18] sm:$0xff]  ;;  %v908_v18 = vld [vmem:[%s1087_s4 + $0x8] sm:$0xff] }
  0x10   : > { %354 = vmatpush.bf16.msra.mxu0 %v886_v3  ;;  %v902_v12 = vld [vmem:[%s1084_s1 + $0xa0] sm:$0xff]  ;;  %v892_v16 = vld [vmem:[%s1084_s1 + $0x58] sm:$0xff]  ;;  %v882_v19 = vld [vmem:[%s1084_s1 + $0x10] sm:$0xff] }
  0x11   : > { %447 = vmatpush.bf16.msra.mxu1 %v895_v4  ;;  %v919_v14 = vld [vmem:[%s1085_s2] ss:$0 sm:$0xff]  ;;  %v901_v17 = vld [vmem:[%s1084_s1 + $0x98] sm:$0xff]  ;;  %v891_v20 = vld [vmem:[%s1084_s1 + $0x50] sm:$0xff] }
  0x12   : > { %547 = vmatpush.bf16.msra.mxu2 %v904_v5  ;;  %277 = vst [vmem:[#allocation2] sm:$0xff] %v919_v14  ;;  %v897_v21 = vld [vmem:[%s1032_s16] sm:$0xff]  ;;  %v900_v22 = vld [vmem:[%s1084_s1 + $0x90] sm:$0xff]  ;;  %v881_v24 = vld [vmem:[%s1084_s1 + $0x8] sm:$0xff] }
  0x13   : > { %278 = vst [vmem:[#allocation2 + $0x8] sm:$0xff] %v919_v14  ;;  %614 = vmatpush.bf16.msra.mxu3 %v909_v13  ;;  %v907_v23 = vld [vmem:[%s1087_s4] sm:$0xff]  ;;  %v890_v25 = vld [vmem:[%s1084_s1 + $0x48] sm:$0xff]  ;;  %v493_v26 = vshll.u32 %v897_v21, 16  ;;  %v491_v31 = vshrl.u32 %v897_v21, 16 }
  0x14   : > { %355 = vmatpush.bf16.msra.mxu0 %v885_v6  ;;  %v899_v27 = vld [vmem:[%s1084_s1 + $0x88] sm:$0xff]  ;;  %v906_v28 = vld [vmem:[%s266_s8] sm:$0xff] }
  0x15   : > { %448 = vmatpush.bf16.msra.mxu1 %v894_v7  ;;  %v880_v29 = vld [vmem:[%s1084_s1] sm:$0xff]  ;;  %v495_v32 = vrot.slane %v493_v26, 1 }
  0x16   : > { %548 = vmatpush.bf16.msra.mxu2 %v903_v8  ;;  %v889_v30 = vld [vmem:[%s1084_s1 + $0x40] sm:$0xff] }
  0x17   : > { %615 = vmatpush.bf16.msra.mxu3 %v908_v18  ;;  %v898_v33 = vld [vmem:[%s1084_s1 + $0x80] sm:$0xff]  ;;  %v496_v36 = vor.u32 %v495_v32, %v491_v31 }
  0x18   : > { %356 = vmatpush.bf16.msra.mxu0 %v884_v10  ;;  %v879_v34 = vld [vmem:[%s1032_s16] sm:$0xff] }
  0x19   : > { %449 = vmatpush.bf16.msra.mxu1 %v893_v11  ;;  %v888_v35 = vld [vmem:[%s1032_s16] sm:$0xff] }
  0x1a   : > { %549 = vmatpush.bf16.msra.mxu2 %v902_v12  ;;  %v281_v37 = vld [vmem:[#allocation2 + $0x1] sm:$0xff]  ;;  %v282_v40 = vld [vmem:[#allocation2 + $0x9] sm:$0x7f]  ;;  %v920_v49 = vld [vmem:[%s1088_s5] ss:$0 sm:$0xff] }
  0x1b   : > { %616 = vmatpush.bf16.msra.mxu3 %v907_v23 }
  0x1c   : > { %357 = vmatpush.bf16.msra.mxu0 %v883_v15 }
  0x1d   : > { %450 = vmatpush.bf16.msra.mxu1 %v892_v16 }
  0x1e   : > { %550 = vmatpush.bf16.msra.mxu2 %v901_v17  ;;  %873 = vmatmul.msk.bf16.vlgmr.msra.gmra.mxu3 %vm605_vm0, %v906_v28 }
  0x20   : > { %358 = vmatpush.bf16.msra.mxu0 %v882_v19 }
  0x21   : > { %451 = vmatpush.bf16.msra.mxu1 %v891_v20 }
  0x22   : > { %551 = vmatpush.bf16.msra.mxu2 %v900_v22 }
  0x24   : > { %359 = vmatpush.bf16.msra.mxu0 %v881_v24 }
  0x25   : > { %452 = vmatpush.bf16.msra.mxu1 %v890_v25 }
  0x26   : > { %552 = vmatpush.bf16.msra.mxu2 %v899_v27 }
  0x28   : > { %360 = vmatpush.bf16.msra.mxu0 %v880_v29 }
  0x29   : > { %453 = vmatpush.bf16.msra.mxu1 %v889_v30 }
  0x2a   : > { %553 = vmatpush.bf16.msra.mxu2 %v898_v33 }
  0x2b   : > { %361 = vmatmul.bf16.vlgmr.msra.gmra.mxu0 %v879_v34 }
  0x2c   : > { %454 = vmatmul.bf16.vlgmr.msra.gmra.mxu1 %v888_v35 }
  0x2d   : > { %554 = vmatmul.bf16.vlgmr.msra.gmra.mxu2 %v496_v36 }
  0xa1   : > { %v618_v47 = vpop.f32.mrf.mxu3 }
  0xa8   : > { %v362_v38 = vpop.f32.mrf.mxu0 }
  0xa9   : > { %v367_v39 = vadd.f32 %v362_v38, %v281_v37  ;;  %v455_v41 = vpop.f32.mrf.mxu1  ;;  %v620_v60 = vpop.f32.mrf.mxu3 }
  0xab   : > { %369 = vst [vmem:[#allocation2 + $0x1] sm:$0xff] %v367_v39 }
  0xb0   : > { %v364_v42 = vpop.f32.mrf.mxu0  ;;  %v555_v45 = vpop.f32.mrf.mxu2 }
  0xb1   : > { %v368_v43 = vadd.f32 %v364_v42, %v282_v40  ;;  %v457_v53 = vpop.f32.mrf.mxu1 }
  0xb2   : > { %v373_v44 = vld [vmem:[#allocation2] sm:$0xff] }
  0xb3   : > { %v460_v46 = vadd.f32 %v455_v41, %v373_v44  ;;  %370 = vst [vmem:[#allocation2 + $0x9] sm:$0x7f] %v368_v43 }
  0xb5   : > { %v560_v48 = vadd.f32 %v555_v45, %v460_v46 }
  0xb7   : > { %562 = vst [vmem:[#allocation2] sm:$0xff] %v560_v48  ;;  %v623_v50 = vadd.f32 %v618_v47, %v560_v48 }
  0xb8   : > { %v557_v57 = vpop.f32.mrf.mxu2 }
  0xb9   : > { %v629_v51 = vadd.f32 %v920_v49, %v623_v50 }
  0xba   : > { %v374_v52 = vld [vmem:[#allocation2 + $0x8] sm:$0xff] }
  0xbb   : > { %v461_v54 = vadd.f32 %v457_v53, %v374_v52  ;;  %v631_v55 = vmax.f32 %v629_v51, 0.0 }
  0xbd   : > { %463 = vst [vmem:[#allocation2 + $0x8] sm:$0xff] %v461_v54 }
  0xbe   : > { %633 = vst [vmem:[%s271_s27] sm:$0xff] %v631_v55 }
  0xc4   : > { %v467_v56 = vld [vmem:[#allocation2 + $0x8] sm:$0x7f] }
  0xc5   : > { %v561_v58 = vadd.f32 %v557_v57, %v467_v56 }
  0xc7   : > { %563 = vst [vmem:[#allocation2 + $0x8] sm:$0x7f] %v561_v58 }
  0xce   : > { %v565_v59 = vld [vmem:[#allocation2 + $0x8] sm:$0xff] }
  0xcf   : > { %v624_v61 = vadd.f32 %v620_v60, %v565_v59 }
  0xd1   : > { %v630_v62 = vadd.f32 %v920_v49, %v624_v61 }
  0xd3   : > { %v632_v63 = vmax.f32 %v630_v62, 0.0 }
  0xd5   : > { %634 = vst [vmem:[%s271_s27 + $0x8] sm:$0xff] %v632_v63 }
  0xd6 PF: > { %s16_s21 = sadd.s32 1, %s927_s21  }
  0xd7   : > { %p13_p4 = scmp.ge.s32.totalorder %s16_s21, 4  }
  0xd9   :  { %15 = sbr.rel (!%p13_p4) target bundleno = 1 (0x1), region = 79 }

</bundles_post_ra>
